<compile_context>
chip_gen: v6e
topology: v6e:2x2x1
jax: 0.10.0
libtpu: 0.0.40
codegen_flags: <defaults>
</compile_context>

<pallas_src>
import functools

import jax
import jax.numpy as jnp
from jax.experimental import pallas as pl
from jax.experimental.pallas import tpu as pltpu

_LANES = 128
_DEFAULT_TILE_ROWS = 8192       # (8192, 128) f32 tile = 4 MiB
_ACC_ROWS = 8                   # f32 accumulator sublanes per core


def _round_up(a, b):
    return (a + b - 1) // b * b


def _vmem_capacity_bytes():
    """Physical VMEM per TensorCore; conservative 64 MiB (v7x) if unknown."""
    try:
        info = pltpu.get_tpu_info()
        cap = getattr(info, "vmem_capacity_bytes", None)
        if cap:
            return int(cap)
    except Exception:
        pass
    return 64 << 20


def _apply_clamp(x, clamp_min, clamp_max):
    # torch.where(x > cmin, x, cmin) == maximum(x, cmin) for non-NaN inputs
    # (single VALU op instead of compare+select, per perf review).
    if clamp_min is not None:
        x = jnp.maximum(x, jnp.float32(clamp_min))
    if clamp_max is not None:
        x = jnp.minimum(x, jnp.float32(clamp_max))
    return x


def _pow2_exact(k_i32, *, in_kernel):
    """Exactly 2**k (k int, normal-f32 exponent range) via exponent bits."""
    if in_kernel:
        bits = ((jnp.reshape(k_i32, (1, 1)) + jnp.int32(127)) << 23)
        return pltpu.bitcast(bits.astype(jnp.int32), jnp.float32)[0, 0]
    bits = ((k_i32 + jnp.int32(127)) << 23).astype(jnp.int32)
    return jax.lax.bitcast_convert_type(bits, jnp.float32)


def _qparams(q_min, q_max, quant_min, quant_max, use_zero_point, *, in_kernel):
    """RangeCollector fixup + Quantizer.calculate_scale / calculate_zero_point."""
    q_min = q_min.astype(jnp.float32)
    q_max = q_max.astype(jnp.float32)
    if not use_zero_point:                      # symmetric range
        m = jnp.maximum(jnp.abs(q_min), jnp.abs(q_max))
        q_min = -m
        q_max = m
    q_max = jnp.where(q_min >= q_max, q_min + jnp.float32(1e-5), q_max)

    dr = q_max - q_min
    tr = jnp.float32(quant_max - quant_min)
    log2c = jnp.ceil(jnp.log2(dr / tr))
    log2c = jnp.where(jnp.isinf(log2c), jnp.float32(0.0), log2c)
    log2c = jnp.where(dr <= jnp.float32(0.0), jnp.float32(0.0), log2c)
    k = log2c.astype(jnp.int32)
    scale = _pow2_exact(k, in_kernel=in_kernel)        # exact power of two
    inv_scale = _pow2_exact(-k, in_kernel=in_kernel)   # exact 1/scale
    if use_zero_point:
        # PyTorch operator precedence: trunc(quant_min - (q_min / scale)).
        t = jnp.float32(quant_min) - q_min * inv_scale
        zero_point = jnp.where(t >= 0, jnp.floor(t), jnp.ceil(t))   # trunc
    else:
        zero_point = jnp.float32(0.0)
    return scale, inv_scale, zero_point


# ---------------------------------------------------------------------------
# Fused single-block fast path (whole tensor in one VMEM block).
# ---------------------------------------------------------------------------
def _fused_kernel(x_ref, o_ref, *, quant_min, quant_max, use_zero_point,
                  clamp_min, clamp_max):
    x = x_ref[...].astype(jnp.float32)
    x = _apply_clamp(x, clamp_min, clamp_max)
    q_min = jnp.min(x)
    q_max = jnp.max(x)
    scale, inv_scale, zp = _qparams(q_min, q_max, quant_min, quant_max,
                                    use_zero_point, in_kernel=True)
    xq = jnp.round(x * inv_scale + zp)
    xq = jnp.minimum(jnp.maximum(xq, jnp.float32(quant_min)),
                     jnp.float32(quant_max))
    o_ref[...] = ((xq - zp) * scale).astype(o_ref.dtype)


# ---------------------------------------------------------------------------
# Two-pass tiled path.
# ---------------------------------------------------------------------------
def _minmax_kernel(x_ref, min_ref, max_ref, *, clamp_min, clamp_max,
                   rows, tile_r, tiles_per_core, num_tiles, ragged):
    c = pl.program_id(0)     # core split (parallel)
    i = pl.program_id(1)     # tile within core (arbitrary)

    @pl.when(i == 0)
    def _init():
        min_ref[...] = jnp.full(min_ref.shape, jnp.inf, dtype=min_ref.dtype)
        max_ref[...] = jnp.full(max_ref.shape, -jnp.inf, dtype=max_ref.dtype)

    x = x_ref[...].astype(jnp.float32)
    x = _apply_clamp(x, clamp_min, clamp_max)

    def _acc(xmin, xmax):
        min_ref[...] = jnp.minimum(min_ref[...],
                                   jnp.min(xmin, axis=0, keepdims=True))
        max_ref[...] = jnp.maximum(max_ref[...],
                                   jnp.max(xmax, axis=0, keepdims=True))

    if ragged:
        gt = c * tiles_per_core + i          # global tile id (may be phantom)
        last = num_tiles - 1

        @pl.when(gt < last)                  # full tiles: no mask work at all
        def _full_tile():
            _acc(x, x)

        @pl.when(gt >= last)                 # ragged last tile + phantom tiles
        def _partial_tile():
            row = gt * tile_r + jax.lax.broadcasted_iota(jnp.int32, x.shape, 0)
            valid = row < rows
            _acc(jnp.where(valid, x, jnp.inf), jnp.where(valid, x, -jnp.inf))
    else:
        _acc(x, x)


def _quant_kernel(pmin_ref, pmax_ref, x_ref, o_ref, *, quant_min, quant_max,
                  use_zero_point, clamp_min, clamp_max):
    # Tiny per-step scalar prologue (folds the inter-pass epilogue in-kernel).
    q_min = jnp.min(pmin_ref[...])
    q_max = jnp.max(pmax_ref[...])
    scale, inv_scale, zp = _qparams(q_min, q_max, quant_min, quant_max,
                                    use_zero_point, in_kernel=True)

    # Fold the activation clamp into tightened integer clip bounds (exact,
    # since the affine quantization map is monotone and scale is 2**k).
    qmin_f = jnp.float32(quant_min)
    qmax_f = jnp.float32(quant_max)
    lo = qmin_f
    hi = qmax_f
    if clamp_min is not None:
        rc_lo = jnp.round(jnp.float32(clamp_min) * inv_scale + zp)
        lo = jnp.minimum(jnp.maximum(rc_lo, qmin_f), qmax_f)
    if clamp_max is not None:
        rc_hi = jnp.round(jnp.float32(clamp_max) * inv_scale + zp)
        hi = jnp.minimum(jnp.maximum(rc_hi, qmin_f), qmax_f)
    zp_scale = zp * scale

    # Hot elementwise path: mul + add + round + clip + mul + sub.
    x = x_ref[...].astype(jnp.float32)
    xq = jnp.minimum(jnp.maximum(jnp.round(x * inv_scale + zp), lo), hi)
    o_ref[...] = (xq * scale - zp_scale).astype(o_ref.dtype)


def _two_pass(x2d, *, quant_min, quant_max, use_zero_point, clamp_min,
              clamp_max, tile_rows, vmem_cap):
    rows, lanes = x2d.shape
    itemsize = jnp.dtype(x2d.dtype).itemsize
    sub_mult = max(8, 32 // itemsize)            # 8 f32 / 16 bf16 / 32 int8
    tile_r = _round_up(max(1, min(tile_rows, _round_up(rows, sub_mult))),
                       sub_mult)
    num_tiles = pl.cdiv(rows, tile_r)
    ragged = (rows % tile_r) != 0
    tpc = pl.cdiv(num_tiles, 2)                  # per-core tile count (v7x)

    tile_bytes_f32 = tile_r * lanes * 4
    vmem_limit = int(min(vmem_cap * 3 // 4, max(32 << 20, 6 * tile_bytes_f32)))

    # ---- pass 1: per-lane min/max, sharded over 2 TensorCores ----
    reduce_kernel = functools.partial(
        _minmax_kernel, clamp_min=clamp_min, clamp_max=clamp_max,
        rows=rows, tile_r=tile_r, tiles_per_core=tpc, num_tiles=num_tiles,
        ragged=ragged)

    def _x_map(c, i):
        # Clamp so phantom tiles (grid padding when num_tiles is odd) re-read
        # a valid tile: harmless duplicates for min/max, fully masked if ragged.
        return (jnp.minimum(c * tpc + i, num_tiles - 1), 0)

    pmin, pmax = pl.pallas_call(
        reduce_kernel,
        out_shape=(jax.ShapeDtypeStruct((2 * _ACC_ROWS, lanes), jnp.float32),
                   jax.ShapeDtypeStruct((2 * _ACC_ROWS, lanes), jnp.float32)),
        grid=(2, tpc),
        in_specs=[pl.BlockSpec((tile_r, lanes), _x_map)],
        out_specs=(pl.BlockSpec((_ACC_ROWS, lanes), lambda c, i: (c, 0)),
                   pl.BlockSpec((_ACC_ROWS, lanes), lambda c, i: (c, 0))),
        compiler_params=pltpu.CompilerParams(
            dimension_semantics=("parallel", "arbitrary"),
            vmem_limit_bytes=vmem_limit),
    )(x2d)

    # ---- pass 2: elementwise quantize/dequantize (params derived in-kernel
    # from the tiny partials -> no inter-pass XLA scalar ops / dispatch) ----
    quant_kernel = functools.partial(
        _quant_kernel, quant_min=quant_min, quant_max=quant_max,
        use_zero_point=use_zero_point, clamp_min=clamp_min,
        clamp_max=clamp_max)
    out2d = pl.pallas_call(
        quant_kernel,
        out_shape=jax.ShapeDtypeStruct((rows, lanes), x2d.dtype),
        grid=(num_tiles,),
        in_specs=[pl.BlockSpec((2 * _ACC_ROWS, lanes), lambda i: (0, 0)),
                  pl.BlockSpec((2 * _ACC_ROWS, lanes), lambda i: (0, 0)),
                  pl.BlockSpec((tile_r, lanes), lambda i: (i, 0))],
        out_specs=pl.BlockSpec((tile_r, lanes), lambda i: (i, 0)),
        compiler_params=pltpu.CompilerParams(
            dimension_semantics=("parallel",),
            vmem_limit_bytes=vmem_limit),
    )(pmin, pmax, x2d)
    return out2d


# ---------------------------------------------------------------------------
# Public wrapper (QuantizeActivation.forward -> x_dequant).
# ---------------------------------------------------------------------------
def quantize_activation(x, *, bit_width=8, use_zero_point=True,
                        clamp_values=(None, None),
                        tile_rows=_DEFAULT_TILE_ROWS, force_two_pass=False):
    clamp_min, clamp_max = clamp_values
    quant_min = -(2 ** (bit_width - 1))
    quant_max = 2 ** (bit_width - 1) - 1

    orig_shape = x.shape
    orig_dtype = x.dtype
    n = x.size
    vmem_cap = _vmem_capacity_bytes()
    f32_bytes = n * 4
    fast_max_bytes = vmem_cap // 8          # ~16 MiB v5e/v6e, ~8 MiB v7x
    lane_ok = (n % _LANES) == 0

    kernel_kwargs = dict(quant_min=quant_min, quant_max=quant_max,
                         use_zero_point=use_zero_point,
                         clamp_min=clamp_min, clamp_max=clamp_max)

    def _fused(x2d):
        rows, cols = x2d.shape
        return pl.pallas_call(
            functools.partial(_fused_kernel, **kernel_kwargs),
            out_shape=jax.ShapeDtypeStruct((rows, cols), orig_dtype),
            in_specs=[pl.BlockSpec((rows, cols), lambda: (0, 0))],
            out_specs=pl.BlockSpec((rows, cols), lambda: (0, 0)),
            compiler_params=pltpu.CompilerParams(
                vmem_limit_bytes=int(vmem_cap * 3 // 4)),
        )(x2d)

    if not force_two_pass:
        if lane_ok and f32_bytes <= fast_max_bytes:
            # Zero-copy lane-dense 2-D view of the flat tensor.
            out2d = _fused(x.reshape(n // _LANES, _LANES))
            return out2d.reshape(orig_shape)
        if (not lane_ok) and f32_bytes * 8 <= fast_max_bytes:
            # (1, n) full-array block: ragged lane tail handled by the
            # compiler's logical-shape masking, no wrapper pad/copy.
            out2d = _fused(x.reshape(1, n))
            return out2d.reshape(orig_shape)

    if lane_ok:
        out2d = _two_pass(x.reshape(n // _LANES, _LANES), vmem_cap=vmem_cap,
                          tile_rows=tile_rows, **kernel_kwargs)
        return out2d.reshape(orig_shape)

    # TODO(synk): handle a ragged flat tail of a LARGE tensor in-kernel
    # (masked last lane tile) instead of this pad copy; only reached when
    # numel % 128 != 0 AND the tensor is too big for the fused path.
    x_flat = x.reshape(-1)
    pad = _LANES - (n % _LANES)
    x_flat = jnp.concatenate(
        [x_flat, jnp.full((pad,), x_flat[0], dtype=orig_dtype)])
    out2d = _two_pass(x_flat.reshape(-1, _LANES), vmem_cap=vmem_cap,
                      tile_rows=tile_rows, **kernel_kwargs)
    return out2d.reshape(-1)[:n].reshape(orig_shape)


# ---------------------------------------------------------------------------
# Pure-JAX reference mirroring the PyTorch module (verification only).
# ---------------------------------------------------------------------------
def _reference(x, *, bit_width=8, use_zero_point=True,
               clamp_values=(None, None)):
    clamp_min, clamp_max = clamp_values
    quant_min = -(2 ** (bit_width - 1))
    quant_max = 2 ** (bit_width - 1) - 1
    xf = x.astype(jnp.float32)
    if clamp_min is not None:
        xf = jnp.where(xf > clamp_min, xf, jnp.float32(clamp_min))
    if clamp_max is not None:
        xf = jnp.where(xf < clamp_max, xf, jnp.float32(clamp_max))
    q_min = jnp.min(xf)
    q_max = jnp.max(xf)
    scale, _, zp = _qparams(q_min, q_max, quant_min, quant_max,
                            use_zero_point, in_kernel=False)
    xq = jnp.clip(jnp.round(xf / scale + zp), quant_min, quant_max)
    return ((xq - zp) * scale).astype(x.dtype)


if __name__ == "__main__":
    key = jax.random.PRNGKey(0)
    k0, k1, k2 = jax.random.split(key, 3)

    # 1) Fused single-block fast path, asymmetric (default config).
    x1 = jax.random.normal(k0, (2, 4, 16, 16), dtype=jnp.float32) * 3.0 + 0.5
    out1 = jax.block_until_ready(
        quantize_activation(x1, bit_width=8, use_zero_point=True))
    ref1 = _reference(x1, bit_width=8, use_zero_point=True)
    assert out1.shape == x1.shape and out1.dtype == x1.dtype
    assert jnp.allclose(out1, ref1, atol=1e-5, rtol=1e-5), "fast path mismatch"

    # 2) Tiled two-pass path (forced), symmetric + two-sided clamp, ragged
    #    tiles; exercises the 2-TensorCore pass-1 split and fused clip bounds.
    x2 = jax.random.normal(k1, (2, 4, 40, 40), dtype=jnp.float32) * 2.0
    out2 = jax.block_until_ready(
        quantize_activation(x2, bit_width=8, use_zero_point=False,
                            clamp_values=(-3.0, 3.0),
                            force_two_pass=True, tile_rows=32))
    ref2 = _reference(x2, bit_width=8, use_zero_point=False,
                      clamp_values=(-3.0, 3.0))
    assert out2.shape == x2.shape and out2.dtype == x2.dtype
    assert jnp.allclose(out2, ref2, atol=1e-5, rtol=1e-5), "two-pass mismatch"

    # 3) Fused path with numel % 128 != 0 (no wrapper pad copy), one-sided clamp.
    x3 = jax.random.normal(k2, (3, 5, 7), dtype=jnp.float32)
    out3 = jax.block_until_ready(
        quantize_activation(x3, bit_width=8, use_zero_point=True,
                            clamp_values=(-1.0, None)))
    ref3 = _reference(x3, bit_width=8, use_zero_point=True,
                      clamp_values=(-1.0, None))
    assert out3.shape == x3.shape and out3.dtype == x3.dtype
    assert jnp.allclose(out3, ref3, atol=1e-5, rtol=1e-5), "ragged fused mismatch"

    print("KERNEL_OK")
</pallas_src>

<mosaic_0001>
module attributes {stable_mosaic.version = 11 : i64} {
  func.func @_fused_kernel(%arg0: memref<16x128xf32, #tpu.memory_space<vmem>>, %arg1: memref<16x128xf32, #tpu.memory_space<vmem>>) attributes {dimension_semantics = [], scalar_prefetch = 0 : i64, scratch_operands = 0 : i64, tpu.core_type = #tpu.core_type<tc>} {
    %c0 = arith.constant 0 : index
    %c0_0 = arith.constant 0 : index
    %0 = vector.load %arg0[%c0, %c0_0] : memref<16x128xf32, #tpu.memory_space<vmem>>, vector<16x128xf32>
    %1 = vector.shape_cast %0 : vector<16x128xf32> to vector<1x16x128xf32>
    %cst = arith.constant dense<0x7F800000> : vector<1xf32>
    %2 = vector.multi_reduction <minimumf>, %1, %cst [1, 2] : vector<1x16x128xf32> to vector<1xf32>
    %3 = vector.shape_cast %2 : vector<1xf32> to vector<1x1x1xf32>
    %4 = vector.extract %3[0, 0, 0] : f32 from vector<1x1x1xf32>
    %5 = vector.shape_cast %0 : vector<16x128xf32> to vector<1x16x128xf32>
    %cst_1 = arith.constant dense<0xFF800000> : vector<1xf32>
    %6 = vector.multi_reduction <maximumf>, %5, %cst_1 [1, 2] : vector<1x16x128xf32> to vector<1xf32>
    %7 = vector.shape_cast %6 : vector<1xf32> to vector<1x1x1xf32>
    %8 = vector.extract %7[0, 0, 0] : f32 from vector<1x1x1xf32>
    %9 = arith.cmpf oge, %4, %8 : f32
    %cst_2 = arith.constant 9.99999974E-6 : f32
    %10 = arith.addf %4, %cst_2 : f32
    %11 = arith.select %9, %10, %8 : f32
    %12 = arith.subf %11, %4 : f32
    %cst_3 = arith.constant 2.550000e+02 : f32
    %13 = arith.divf %12, %cst_3 : f32
    %14 = math.log %13 : f32
    %cst_4 = arith.constant 2.000000e+00 : f32
    %15 = math.log %cst_4 : f32
    %16 = arith.divf %14, %15 : f32
    %17 = math.ceil %16 : f32
    %18 = math.absf %17 : f32
    %cst_5 = arith.constant 0x7F800000 : f32
    %19 = arith.cmpf oeq, %18, %cst_5 : f32
    %cst_6 = arith.constant 0.000000e+00 : f32
    %20 = arith.select %19, %cst_6, %17 : f32
    %cst_7 = arith.constant 0.000000e+00 : f32
    %21 = arith.cmpf ole, %12, %cst_7 : f32
    %cst_8 = arith.constant 0.000000e+00 : f32
    %22 = arith.select %21, %cst_8, %20 : f32
    %23 = arith.fptosi %22 : f32 to i32
    %24 = vector.broadcast %23 : i32 to vector<1x1xi32>
    %c127_i32 = arith.constant 127 : i32
    %25 = vector.broadcast %c127_i32 : i32 to vector<1x1xi32>
    %26 = arith.addi %24, %25 : vector<1x1xi32>
    %c23_i32 = arith.constant 23 : i32
    %27 = vector.broadcast %c23_i32 : i32 to vector<1x1xi32>
    %28 = arith.shli %26, %27 : vector<1x1xi32>
    %29 = tpu.bitcast %28 : vector<1x1xi32> -> vector<1x1xf32>
    %30 = vector.extract %29[0, 0] : f32 from vector<1x1xf32>
    %c0_i32 = arith.constant 0 : i32
    %31 = arith.subi %c0_i32, %23 : i32
    %32 = vector.broadcast %31 : i32 to vector<1x1xi32>
    %c127_i32_9 = arith.constant 127 : i32
    %33 = vector.broadcast %c127_i32_9 : i32 to vector<1x1xi32>
    %34 = arith.addi %32, %33 : vector<1x1xi32>
    %c23_i32_10 = arith.constant 23 : i32
    %35 = vector.broadcast %c23_i32_10 : i32 to vector<1x1xi32>
    %36 = arith.shli %34, %35 : vector<1x1xi32>
    %37 = tpu.bitcast %36 : vector<1x1xi32> -> vector<1x1xf32>
    %38 = vector.extract %37[0, 0] : f32 from vector<1x1xf32>
    %39 = arith.mulf %4, %38 : f32
    %cst_11 = arith.constant -1.280000e+02 : f32
    %40 = arith.subf %cst_11, %39 : f32
    %cst_12 = arith.constant 0.000000e+00 : f32
    %41 = arith.cmpf oge, %40, %cst_12 : f32
    %42 = math.floor %40 : f32
    %43 = math.ceil %40 : f32
    %44 = arith.select %41, %42, %43 : f32
    %45 = vector.broadcast %38 : f32 to vector<16x128xf32>
    %46 = arith.mulf %0, %45 : vector<16x128xf32>
    %47 = vector.broadcast %44 : f32 to vector<16x128xf32>
    %48 = arith.addf %46, %47 : vector<16x128xf32>
    %49 = math.roundeven %48 : vector<16x128xf32>
    %cst_13 = arith.constant -1.280000e+02 : f32
    %50 = vector.broadcast %cst_13 : f32 to vector<16x128xf32>
    %51 = arith.maximumf %49, %50 : vector<16x128xf32>
    %cst_14 = arith.constant 1.270000e+02 : f32
    %52 = vector.broadcast %cst_14 : f32 to vector<16x128xf32>
    %53 = arith.minimumf %51, %52 : vector<16x128xf32>
    %54 = vector.broadcast %44 : f32 to vector<16x128xf32>
    %55 = arith.subf %53, %54 : vector<16x128xf32>
    %56 = vector.broadcast %30 : f32 to vector<16x128xf32>
    %57 = arith.mulf %55, %56 : vector<16x128xf32>
    %c0_15 = arith.constant 0 : index
    %c0_16 = arith.constant 0 : index
    %58 = vector.load %arg1[%c0_15, %c0_16] : memref<16x128xf32, #tpu.memory_space<vmem>>, vector<16x128xf32>
    tpu.vector_store %arg1[%c0_15, %c0_16], %57 {strides = array<i32>} : memref<16x128xf32, #tpu.memory_space<vmem>>, vector<16x128xf32>,
    return
  }
}

</mosaic_0001>

<bundles_post_ra>
// kernel: tpu_custom_call.1
= control target key start
LH: loop header
LB: loop body
LE: loop exit
PB: predicated region body
PF: predicated region fallthrough
CT: control target
= control target key end

     0   :  { %6 = vsyncpa [#allocation3], 0  ;;  %s232_s0 = inlined_call_operand.hbm [shape: f32[16,128], index: 0, kind: input, shape index: {}]   ;;  %s233_s1 = inlined_call_operand.hbm [shape: f32[16,128], index: 1, kind: output, shape index: {}]  }
   0x1   :  { %7 = vsyncpa [#allocation4], 0  ;;  %s197_s6 = smov [#allocation2]  }
   0x2   :  { %s13_s7 = sshll.u32 %s197_s6, 4  ;;  %s14_s7 = int_to_ptr.vmem [resolvable:$true] %s13_s7 }
   0x3   :  { %s161_s8 = scalar_lea.vmem %s14_s7, 256  ;;  %p166_p1 = scmp.lt.s32.totalorder %s14_s7, %s14_s7 }
   0x4   :  { %p162_p0 = scmp.ne.s32.totalorder %s14_s7, %s161_s8  ;;  %p167_p2 = scmp.lt.s32.totalorder %s161_s8, %s161_s8 }
   0x6   :  { %p168_p3 = por %p167_p2, %p166_p1 }
   0x8   :  { %p169_p4 = pnand %p168_p3, %p162_p0 }
   0xa   :  { %172 = shalt.err (!%p169_p4)
}
   0xb   :  { %s198_s9 = smov 128   ;;  %s199_s10 = smov 8  }
   0xc   :  { %19 = dma.hbm_to_vmem [thread:$0]  %s232_s0, 256, %s14_s7, [#allocation3], %s198_s9, %s198_s9, %s199_s10  }
   0xd   :  { %193 = dma.done.wait [#allocation3], 256  }
   0xe   :  { %194 = vsyncadd [#allocation3], 4294967040  ;;  %v23_v0 = vld [vmem:[#allocation2] sm:$0xff]  ;;  %v24_v1 = vld [vmem:[#allocation2 + $0x8] sm:$0xff]  ;;  %s200_s29 = smov [#allocation5]  }
   0xf   :  { %v25_v2 = vmin.f32 %v23_v0, %v24_v1  ;;  %v35_v3 = vmax.f32 %v23_v0, %v24_v1  ;;  %s107_s30 = sshll.u32 %s200_s29, 4  ;;  %s108_s30 = int_to_ptr.vmem [resolvable:$true] %s107_s30 }
  0x10   :  { %s173_s2 = scalar_lea.vmem %s108_s30, 256  ;;  %p178_p10 = scmp.lt.s32.totalorder %s108_s30, %s108_s30 }
  0x11   :  { %26 = vmin.xlane.f32.xlu0 %v25_v2  ;;  %p174_p9 = scmp.ne.s32.totalorder %s108_s30, %s173_s2  ;;  %p179_p11 = scmp.lt.s32.totalorder %s173_s2, %s173_s2 }
  0x13   :  { %p180_p12 = por %p179_p11, %p178_p10 }
  0x15   :  { %36 = vmax.xlane.f32.xlu0 %v35_v3  ;;  %p181_p13 = pnand %p180_p12, %p174_p9 }
  0x9a   :  { %v27_v4 = vpop.xlane.xlu0 %26 }
  0x9b   :  { %v28_v5 = vrot.slane %v27_v4, 4 }
  0x9d   :  { %v29_v6 = vmin.f32 %v27_v4, %v28_v5 }
  0x9e   :  { %v37_v7 = vpop.xlane.xlu0 %36 }
  0x9f   :  { %v30_v8 = vrot.slane %v29_v6, 2  ;;  %v38_v9 = vrot.slane %v37_v7, 4 }
  0xa1   :  { %v39_v10 = vmax.f32 %v37_v7, %v38_v9  ;;  %v31_v11 = vmin.f32 %v29_v6, %v30_v8 }
  0xa3   :  { %v40_v12 = vrot.slane %v39_v10, 2  ;;  %v32_v13 = vrot.slane %v31_v11, 1 }
  0xa5   :  { %v41_v14 = vmax.f32 %v39_v10, %v40_v12  ;;  %v33_v15 = vmin.f32 %v31_v11, %v32_v13 }
  0xa7   :  { %119 = vpush %v33_v15  ;;  %v42_v16 = vrot.slane %v41_v14, 1 }
  0xa9   :  { %v43_v17 = vmax.f32 %v41_v14, %v42_v16 }
  0xab   :  { %121 = vpush %v43_v17 }
  0xd8   :  { %s217_s0 = spop %119 }
  0xd9   :  { %s46_s14 = sadd.f32 1e-05, %s217_s0 }
  0xdc   :  { %s122_s13 = spop %121 }
  0xdd   :  { %p45_p5 = scmp.ge.f32.partialorder %s217_s0, %s122_s13 }
  0xdf   :  { %s235_s14 = smov (!%p45_p5, %s46_s14), %s122_s13 }
  0xe0   :  { %s48_s15 = ssub.f32 %s235_s14, %s217_s0 }
  0xe2   :  { %s51_s16 = smul.f32 0.003921569, %s48_s15  ;;  %p63_p7 = scmp.le.f32.partialorder %s48_s15, 0.0 }
  0xe4   :  { %v52_v18 = vstv %s51_s16 }
  0xe5   :  { %151 = vlog2.f32 %v52_v18 }
  0xf2   :  { %v152_v19 = vpop.eup %151 }
  0xf3   :  { %v54_v20 = vmul.f32 0.6931472, %v152_v19 }
  0xf5   :  { %123 = vpush %v54_v20 }
 0x126   :  { %s124_s17 = spop %123 }
 0x127   :  { %s58_s18 = smul.f32 1.442695, %s124_s17 }
 0x129   :  { %s59_s19 = sceil.f32 %s58_s18 }
 0x12a   :  { %s60_s20 = sand.u32 2147483647, %s59_s19 }
 0x12b   :  { %p61_p6 = scmp.eq.f32.partialorder %s60_s20, inf }
 0x12d   :  { %s237_s19 = smov (%p61_p6, %s59_s19), 0.0 }
 0x12e   :  { %s239_s19 = smov (%p63_p7, %s237_s19), 0.0 }
 0x12f   :  { %s126_s21 = scvt.f32.s32 %s239_s19 }
 0x131   :  { %v66_v21 = vstv %s126_s21  ;;  %s71_s22 = ssub.s32 0, %s126_s21 }
 0x132   :  { %v67_v22 = vadd.s32 127, %v66_v21  ;;  %v72_v23 = vstv %s71_s22 }
 0x133   :  { %v73_v24 = vadd.s32 127, %v72_v23 }
 0x134   :  { %v68_v25 = vshll.u32 %v67_v22, 23 }
 0x135   :  { %v74_v26 = vshll.u32 %v73_v24, 23 }
 0x136   :  { %127 = vpush %v68_v25 }
 0x137   :  { %129 = vpush %v74_v26 }
 0x167   :  { %s222_s23 = spop %127 }
 0x168   :  { %s130_s24 = spop %129  ;;  %v97_v52 = vstv %s222_s23 }
 0x169   :  { %s77_s25 = smul.f32 %s130_s24, %s217_s0  ;;  %v83_v27 = vstv %s130_s24 }
 0x16a   :  { %v84_v28 = vmul.f32 %v83_v27, %v23_v0  ;;  %v85_v29 = vmul.f32 %v83_v27, %v24_v1 }
 0x16b   :  { %s78_s26 = ssub.f32 -128.0, %s77_s25 }
 0x16d   :  { %p79_p8 = scmp.ge.f32.partialorder %s78_s26, 0.0  ;;  %s80_s27 = sfloor.f32 %s78_s26 }
 0x16e   :  { %s81_s28 = sceil.f32 %s78_s26 }
 0x16f   :  { %s241_s27 = smov (!%p79_p8, %s80_s27), %s81_s28 }
 0x170   :  { %v86_v30 = vstv %s241_s27 }
 0x171   :  { %v87_v31 = vadd.f32 %v86_v30, %v84_v28  ;;  %v88_v32 = vadd.f32 %v86_v30, %v85_v29 }
 0x173   :  { %v133_v33 = vcvt.f32.s32 %v87_v31  ;;  %v141_v34 = vcvt.f32.s32 %v88_v32  ;;  %v131_v36 = vand.u32 2147483647, %v87_v31  ;;  %v136_v39 = vand.u32 2147483648, %v87_v31 }
 0x174   :  { %v139_v40 = vand.u32 2147483647, %v88_v32  ;;  %v144_v42 = vand.u32 2147483648, %v88_v32 }
 0x175   :  { %v134_v35 = vcvt.s32.f32 %v133_v33  ;;  %v142_v37 = vcvt.s32.f32 %v141_v34  ;;  %vm132_vm0 = vcmp.lt.f32.partialorder %v131_v36, 8388608.0 }
 0x176   :  { %vm140_vm1 = vcmp.lt.f32.partialorder %v139_v40, 8388608.0 }
 0x177   :  { %v135_v38 = vand.u32 2147483647, %v134_v35  ;;  %v143_v41 = vand.u32 2147483647, %v142_v37 }
 0x179   :  { %v137_v43 = vor.u32 %v136_v39, %v135_v38  ;;  %v145_v44 = vor.u32 %v144_v42, %v143_v41 }
 0x17b   :  { %v138_v45 = vsel %vm132_vm0, %v137_v43, %v87_v31  ;;  %v146_v46 = vsel %vm140_vm1, %v145_v44, %v88_v32 }
 0x17c   :  { %v91_v47 = vmax.f32 %v138_v45, -128.0  ;;  %v92_v48 = vmax.f32 %v146_v46, -128.0 }
 0x17e   :  { %v93_v49 = vmin.f32 %v91_v47, 127.0  ;;  %v94_v50 = vmin.f32 %v92_v48, 127.0 }
 0x180   :  { %v95_v51 = vsub.f32 %v93_v49, %v86_v30  ;;  %v96_v53 = vsub.f32 %v94_v50, %v86_v30 }
 0x182   :  { %v98_v54 = vmul.f32 %v97_v52, %v95_v51  ;;  %v99_v55 = vmul.f32 %v97_v52, %v96_v53 }
 0x184   :  { %100 = vst [vmem:[#allocation5] sm:$0xff] %v98_v54  ;;  %101 = vst [vmem:[#allocation5 + $0x8] sm:$0xff] %v99_v55 }
 0x185   :  { %184 = shalt.err (!%p181_p13)
}
 0x186   :  { %113 = dma.vmem_to_hbm [thread:$0]  %s108_s30, 256, %s233_s1, [#allocation4], %s198_s9, %s198_s9, %s199_s10  }
 0x187   :  { %195 = dma.done.wait [#allocation4], 256  }
 0x188   :  { %196 = vsyncadd [#allocation4], 4294967040 }
 0x189   :  { %117 = vsyncpa [#allocation3], 1 }
 0x18a   :  { %118 = vsyncpa [#allocation4], 1 }

</bundles_post_ra>
